<compile_context>
chip_gen: v6e
topology: v6e:2x2x1
jax: 0.10.0
libtpu: 0.0.40
codegen_flags: <defaults>
</compile_context>

<pallas_src>
import functools

import jax
import jax.numpy as jnp
from jax.experimental import pallas as pl
from jax.experimental.pallas import tpu as pltpu


def _round_up(n: int, m: int) -> int:
    return ((n + m - 1) // m) * m


def _rnn_fc_kernel(x_ref, w_ref, out_ref, *, B, T, DP, HP):
    """Single-program kernel: hoisted input projection + peeled RNN unroll + Linear.

    x_ref  : (T*B, DP)  time-major-flattened input, feature dim zero-padded to DP
    w_ref  : (DP + HP + 8 + HP, HP) packed weight slab (all sections 8-row aligned):
               rows [0, DP)                      W_ih^T   (rows >= D are zero)
               rows [DP, DP+HP)                  W_hh^T   (zero-padded to HP x HP)
               row  DP+HP                        b_ih + b_hh
               row  DP+HP+1                      b_fc     (lanes >= O are zero)
               rows [DP+HP+8, DP+HP+8+HP)        W_fc^T   (zero-padded to HP x HP)
    out_ref: (B, HP)    fc output, lanes >= O are zero (wrapper slices them off)
    """
    off_whh = DP
    off_bias = DP + HP
    off_bfc = off_bias + 1
    off_wfc = off_bias + 8

    wih_t = w_ref[0:DP, :]                      # (DP, HP)
    whh_t = w_ref[off_whh:off_whh + HP, :]      # (HP, HP)
    bias = w_ref[off_bias:off_bias + 1, :]      # (1, HP)   b_ih + b_hh
    bfc = w_ref[off_bfc:off_bfc + 1, :]         # (1, HP)   b_fc
    wfc_t = w_ref[off_wfc:off_wfc + HP, :]      # (HP, HP)

    # Hoisted input projection for ALL timesteps in one MXU matmul, bias folded in.
    # Kept as a value (vreg-resident); off the serial dependence chain.
    pre = jnp.dot(x_ref[...], wih_t,
                  preferred_element_type=jnp.float32) + bias        # (T*B, HP)

    # Peeled t=0: h_0 == 0, so h_1 = tanh(pre_0) — no recurrence matmul needed.
    h = jnp.tanh(pre[0:B, :])

    # Remaining steps: only the (B,HP)@(HP,HP) matmul + tanh on the critical path.
    # Static unroll is fine for small T; use a bounded-unroll fori_loop for large T.
    for t in range(1, T):
        h = jnp.tanh(pre[t * B:(t + 1) * B, :]
                     + jnp.dot(h, whh_t, preferred_element_type=jnp.float32))

    # Final Linear on the last hidden state (lane-dense (B, HP) store).
    out_ref[...] = jnp.dot(h, wfc_t, preferred_element_type=jnp.float32) + bfc


@jax.jit
def rnn_model_forward(x, params):
    """x: (B, T, inputDim) float32, batch-first (matches PyTorch batch_first=True)."""
    B, T, D = x.shape
    w_ih = params["w_ih"]          # (H, D)
    w_hh = params["w_hh"]          # (H, H)
    b_ih = params["b_ih"]          # (H,)
    b_hh = params["b_hh"]          # (H,)
    w_fc = params["w_fc"]          # (O, H)
    b_fc = params["b_fc"]          # (O,)
    H = w_hh.shape[0]
    O = w_fc.shape[0]

    DP = _round_up(max(D, 1), 8)             # sublane-aligned feature width
    HP = _round_up(max(H, O), 128)           # lane-dense hidden/output width

    f32 = jnp.float32

    # --- layout glue only (tiny at these shapes); compute stays in the kernel ---
    # Time-major flatten of x, feature dim zero-padded to DP.
    x_tm = jnp.transpose(x.astype(f32), (1, 0, 2)).reshape(T * B, D)
    x_pad = jnp.zeros((T * B, DP), f32).at[:, :D].set(x_tm)

    # Packed weight/bias slab (one DMA instead of five), zero-padded to HP lanes.
    rows = DP + HP + 8 + HP
    slab = jnp.zeros((rows, HP), f32)
    slab = slab.at[0:D, 0:H].set(jnp.transpose(w_ih).astype(f32))            # W_ih^T
    slab = slab.at[DP:DP + H, 0:H].set(jnp.transpose(w_hh).astype(f32))      # W_hh^T
    slab = slab.at[DP + HP, 0:H].set((b_ih + b_hh).astype(f32))              # rnn bias
    slab = slab.at[DP + HP + 1, 0:O].set(b_fc.astype(f32))                   # fc bias
    slab = slab.at[DP + HP + 8:DP + HP + 8 + H, 0:O].set(
        jnp.transpose(w_fc).astype(f32))                                     # W_fc^T

    kernel = functools.partial(_rnn_fc_kernel, B=B, T=T, DP=DP, HP=HP)
    vmem = pl.BlockSpec(memory_space=pltpu.MemorySpace.VMEM)

    out_pad = pl.pallas_call(
        kernel,
        out_shape=jax.ShapeDtypeStruct((B, HP), f32),
        in_specs=[vmem, vmem],
        out_specs=vmem,
    )(x_pad, slab)

    return out_pad[:, :O]


def _ref_forward(x, params):
    """Pure-JAX reference for validation."""
    x = x.astype(jnp.float32)
    B, T, D = x.shape
    H = params["w_hh"].shape[0]
    h = jnp.zeros((B, H), jnp.float32)
    for t in range(T):
        h = jnp.tanh(x[:, t, :] @ params["w_ih"].T + params["b_ih"]
                     + h @ params["w_hh"].T + params["b_hh"])
    return h @ params["w_fc"].T + params["b_fc"]


def init_params(key, input_dim, hidden_num, output_dim):
    """Deterministic init mimicking PyTorch's U(-1/sqrt(H), 1/sqrt(H))."""
    ks = jax.random.split(key, 6)
    bound = 1.0 / jnp.sqrt(hidden_num)
    u = lambda k, shape: jax.random.uniform(k, shape, jnp.float32, -bound, bound)
    return {
        "w_ih": u(ks[0], (hidden_num, input_dim)),
        "w_hh": u(ks[1], (hidden_num, hidden_num)),
        "b_ih": u(ks[2], (hidden_num,)),
        "b_hh": u(ks[3], (hidden_num,)),
        "w_fc": u(ks[4], (output_dim, hidden_num)),
        "b_fc": u(ks[5], (output_dim,)),
    }


if __name__ == "__main__":
    # RNNModel(inputDim=4, hiddenNum=32, outputDim=8, layerNum=1, cell='RNN')
    B, T, D, H, O = 2, 8, 4, 32, 8

    key = jax.random.PRNGKey(0)
    kx, kp = jax.random.split(key)
    x = jax.random.normal(kx, (B, T, D), jnp.float32)
    params = init_params(kp, D, H, O)

    out = rnn_model_forward(x, params)
    out = jax.block_until_ready(out)

    ref = _ref_forward(x, params)
    assert out.shape == (B, O)
    # Tolerance absorbs EUP-vs-XLA tanh approximation differences over T steps.
    assert jnp.allclose(out, ref, atol=1e-4, rtol=1e-4), (out, ref)

    print("KERNEL_OK")
</pallas_src>

<mosaic_0001>
module attributes {stable_mosaic.version = 11 : i64} {
  func.func @_rnn_fc_kernel(%arg0: memref<16x8xf32, #tpu.memory_space<vmem>>, %arg1: memref<272x128xf32, #tpu.memory_space<vmem>>, %arg2: memref<2x128xf32, #tpu.memory_space<vmem>>) attributes {dimension_semantics = [], scalar_prefetch = 0 : i64, scratch_operands = 0 : i64, tpu.core_type = #tpu.core_type<tc>} {
    %c0 = arith.constant 0 : index
    %c0_0 = arith.constant 0 : index
    %0 = vector.load %arg1[%c0, %c0_0] : memref<272x128xf32, #tpu.memory_space<vmem>>, vector<8x128xf32>
    %c8 = arith.constant 8 : index
    %c0_1 = arith.constant 0 : index
    %1 = vector.load %arg1[%c8, %c0_1] : memref<272x128xf32, #tpu.memory_space<vmem>>, vector<128x128xf32>
    %c136 = arith.constant 136 : index
    %c0_2 = arith.constant 0 : index
    %2 = vector.load %arg1[%c136, %c0_2] : memref<272x128xf32, #tpu.memory_space<vmem>>, vector<1x128xf32>
    %c137 = arith.constant 137 : index
    %c0_3 = arith.constant 0 : index
    %3 = vector.load %arg1[%c137, %c0_3] : memref<272x128xf32, #tpu.memory_space<vmem>>, vector<1x128xf32>
    %c144 = arith.constant 144 : index
    %c0_4 = arith.constant 0 : index
    %4 = vector.load %arg1[%c144, %c0_4] : memref<272x128xf32, #tpu.memory_space<vmem>>, vector<128x128xf32>
    %c0_5 = arith.constant 0 : index
    %c0_6 = arith.constant 0 : index
    %5 = vector.load %arg0[%c0_5, %c0_6] : memref<16x8xf32, #tpu.memory_space<vmem>>, vector<16x8xf32>
    %cst = arith.constant dense<0.000000e+00> : vector<16x128xf32>
    %6 = tpu.matmul %5, %0, %cst {dimension_numbers = #tpu.dot_dimension_numbers<[1], [0], [0], [1], [0, 0, 1, 1], [], []>} : vector<16x8xf32>, vector<8x128xf32>, vector<16x128xf32> -> vector<16x128xf32>
    %7 = vector.broadcast %2 : vector<1x128xf32> to vector<16x128xf32>
    %8 = arith.addf %6, %7 : vector<16x128xf32>
    %9 = vector.extract_strided_slice %8 {offsets = [0, 0], sizes = [2, 128], strides = [1, 1]} : vector<16x128xf32> to vector<2x128xf32>
    %10 = math.tanh %9 : vector<2x128xf32>
    %11 = vector.extract_strided_slice %8 {offsets = [2, 0], sizes = [2, 128], strides = [1, 1]} : vector<16x128xf32> to vector<2x128xf32>
    %cst_7 = arith.constant dense<0.000000e+00> : vector<2x128xf32>
    %12 = tpu.matmul %10, %1, %cst_7 {dimension_numbers = #tpu.dot_dimension_numbers<[1], [0], [0], [1], [0, 0, 1, 1], [], []>} : vector<2x128xf32>, vector<128x128xf32>, vector<2x128xf32> -> vector<2x128xf32>
    %13 = arith.addf %11, %12 : vector<2x128xf32>
    %14 = math.tanh %13 : vector<2x128xf32>
    %15 = vector.extract_strided_slice %8 {offsets = [4, 0], sizes = [2, 128], strides = [1, 1]} : vector<16x128xf32> to vector<2x128xf32>
    %cst_8 = arith.constant dense<0.000000e+00> : vector<2x128xf32>
    %16 = tpu.matmul %14, %1, %cst_8 {dimension_numbers = #tpu.dot_dimension_numbers<[1], [0], [0], [1], [0, 0, 1, 1], [], []>} : vector<2x128xf32>, vector<128x128xf32>, vector<2x128xf32> -> vector<2x128xf32>
    %17 = arith.addf %15, %16 : vector<2x128xf32>
    %18 = math.tanh %17 : vector<2x128xf32>
    %19 = vector.extract_strided_slice %8 {offsets = [6, 0], sizes = [2, 128], strides = [1, 1]} : vector<16x128xf32> to vector<2x128xf32>
    %cst_9 = arith.constant dense<0.000000e+00> : vector<2x128xf32>
    %20 = tpu.matmul %18, %1, %cst_9 {dimension_numbers = #tpu.dot_dimension_numbers<[1], [0], [0], [1], [0, 0, 1, 1], [], []>} : vector<2x128xf32>, vector<128x128xf32>, vector<2x128xf32> -> vector<2x128xf32>
    %21 = arith.addf %19, %20 : vector<2x128xf32>
    %22 = math.tanh %21 : vector<2x128xf32>
    %23 = vector.extract_strided_slice %8 {offsets = [8, 0], sizes = [2, 128], strides = [1, 1]} : vector<16x128xf32> to vector<2x128xf32>
    %cst_10 = arith.constant dense<0.000000e+00> : vector<2x128xf32>
    %24 = tpu.matmul %22, %1, %cst_10 {dimension_numbers = #tpu.dot_dimension_numbers<[1], [0], [0], [1], [0, 0, 1, 1], [], []>} : vector<2x128xf32>, vector<128x128xf32>, vector<2x128xf32> -> vector<2x128xf32>
    %25 = arith.addf %23, %24 : vector<2x128xf32>
    %26 = math.tanh %25 : vector<2x128xf32>
    %27 = vector.extract_strided_slice %8 {offsets = [10, 0], sizes = [2, 128], strides = [1, 1]} : vector<16x128xf32> to vector<2x128xf32>
    %cst_11 = arith.constant dense<0.000000e+00> : vector<2x128xf32>
    %28 = tpu.matmul %26, %1, %cst_11 {dimension_numbers = #tpu.dot_dimension_numbers<[1], [0], [0], [1], [0, 0, 1, 1], [], []>} : vector<2x128xf32>, vector<128x128xf32>, vector<2x128xf32> -> vector<2x128xf32>
    %29 = arith.addf %27, %28 : vector<2x128xf32>
    %30 = math.tanh %29 : vector<2x128xf32>
    %31 = vector.extract_strided_slice %8 {offsets = [12, 0], sizes = [2, 128], strides = [1, 1]} : vector<16x128xf32> to vector<2x128xf32>
    %cst_12 = arith.constant dense<0.000000e+00> : vector<2x128xf32>
    %32 = tpu.matmul %30, %1, %cst_12 {dimension_numbers = #tpu.dot_dimension_numbers<[1], [0], [0], [1], [0, 0, 1, 1], [], []>} : vector<2x128xf32>, vector<128x128xf32>, vector<2x128xf32> -> vector<2x128xf32>
    %33 = arith.addf %31, %32 : vector<2x128xf32>
    %34 = math.tanh %33 : vector<2x128xf32>
    %35 = vector.extract_strided_slice %8 {offsets = [14, 0], sizes = [2, 128], strides = [1, 1]} : vector<16x128xf32> to vector<2x128xf32>
    %cst_13 = arith.constant dense<0.000000e+00> : vector<2x128xf32>
    %36 = tpu.matmul %34, %1, %cst_13 {dimension_numbers = #tpu.dot_dimension_numbers<[1], [0], [0], [1], [0, 0, 1, 1], [], []>} : vector<2x128xf32>, vector<128x128xf32>, vector<2x128xf32> -> vector<2x128xf32>
    %37 = arith.addf %35, %36 : vector<2x128xf32>
    %38 = math.tanh %37 : vector<2x128xf32>
    %cst_14 = arith.constant dense<0.000000e+00> : vector<2x128xf32>
    %39 = tpu.matmul %38, %4, %cst_14 {dimension_numbers = #tpu.dot_dimension_numbers<[1], [0], [0], [1], [0, 0, 1, 1], [], []>} : vector<2x128xf32>, vector<128x128xf32>, vector<2x128xf32> -> vector<2x128xf32>
    %40 = vector.broadcast %3 : vector<1x128xf32> to vector<2x128xf32>
    %41 = arith.addf %39, %40 : vector<2x128xf32>
    %c0_15 = arith.constant 0 : index
    %c0_16 = arith.constant 0 : index
    %42 = vector.load %arg2[%c0_15, %c0_16] : memref<2x128xf32, #tpu.memory_space<vmem>>, vector<2x128xf32>
    tpu.vector_store %arg2[%c0_15, %c0_16], %41 {strides = array<i32>} : memref<2x128xf32, #tpu.memory_space<vmem>>, vector<2x128xf32>,
    return
  }
}

</mosaic_0001>

<bundles_post_ra>
// kernel: rnn_model_forward.1
= control target key start
LH: loop header
LB: loop body
LE: loop exit
PB: predicated region body
PF: predicated region fallthrough
CT: control target
= control target key end

     0   :  { %vm53_vm0 = vcmask 64512   ;;  %v1234_v4 = vmov 0.0   ;;  %s1666_s0 = inlined_call_operand.vmem [shape: f32[16,8], index: 0, kind: input, shape index: {}]   ;;  %s1667_s1 = inlined_call_operand.vmem [shape: f32[272,128], index: 1, kind: input, shape index: {}]   ;;  %s1668_s2 = inlined_call_operand.hbm [shape: f32[2,128], index: 2, kind: output, shape index: {}]  }
   0x1   :  { %v12_v0 = vld [vmem:[%s1667_s1] sm:$0xff]  ;;  %v48_v2 = vld [vmem:[%s1666_s0 + $0x8] sm:$0xff]  ;;  %913 = vmatprep.subr.mxu1 %v1234_v4  ;;  %v1270_v5 = vld [vmem:[%s1667_s1 + $0x78] sm:$0xff] }
   0x2   :  { %v47_v1 = vld [vmem:[%s1666_s0] sm:$0xff]  ;;  %908 = vmatprep.subr.mxu0 %v12_v0 }
   0x3   :  { %910 = vmatprep.mubr.msk.f32.mxu0 %vm53_vm0, %v47_v1  ;;  %v1264_v3 = vld [vmem:[%s1667_s1 + $0x80] sm:$0xff]  ;;  %909 = vmatpush3.msra.mxu0 %v12_v0 }
   0x4   :  { %911 = vmatmul.mubr.msk.f32.vlgmr.msra.gmra.mxu0 %vm53_vm0, %v48_v2  ;;  %914 = vmatpush3.msra.mxu1 %v1264_v3 }
   0x5   :  { %7 = vsyncpa [#allocation3], 0  ;;  %915 = vmatprep.subr.mxu1 %v1234_v4  ;;  %v1277_v6 = vld [vmem:[%s1667_s1 + $0x70] sm:$0xff]  ;;  %948 = vmatprep.subr.mxu0 %v1234_v4  ;;  %v1286_v7 = vld [vmem:[%s1667_s1 + $0x68] sm:$0xff]  ;;  %vm1235_vm1 = vmmov 0   ;;  %s1236_s24 = smov [#allocation2]  }
   0x6   :  { %916 = vmatpush3.msra.mxu1 %v1270_v5  ;;  %949 = vmatpush3.msra.mxu0 %v1264_v3  ;;  %v1295_v8 = vld [vmem:[%s1667_s1 + $0x60] sm:$0xff]  ;;  %v1304_v9 = vld [vmem:[%s1667_s1 + $0x58] sm:$0xff]  ;;  %v1320_v10 = vld [vmem:[%s1667_s1 + $0x50] sm:$0xff]  ;;  %s757_s25 = sshll.u32 %s1236_s24, 4  ;;  %s758_s25 = int_to_ptr.vmem [resolvable:$true] %s757_s25 }
   0x7   :  { %917 = vmatprep.subr.mxu1 %v1234_v4  ;;  %950 = vmatprep.subr.mxu0 %v1234_v4  ;;  %v1328_v11 = vld [vmem:[%s1667_s1 + $0x48] sm:$0xff]  ;;  %v1337_v12 = vld [vmem:[%s1667_s1 + $0x40] sm:$0xff]  ;;  %v1346_v13 = vld [vmem:[%s1667_s1 + $0x38] sm:$0xff]  ;;  %s1212_s26 = scalar_lea.vmem %s758_s25, 32  ;;  %p1217_p1 = scmp.lt.s32.totalorder %s758_s25, %s758_s25 }
   0x8   :  { %918 = vmatpush3.msra.mxu1 %v1277_v6  ;;  %951 = vmatpush3.msra.mxu0 %v1270_v5  ;;  %v1351_v14 = vld [vmem:[%s1667_s1 + $0x30] sm:$0xff]  ;;  %v1361_v15 = vld [vmem:[%s1667_s1 + $0x28] sm:$0xff]  ;;  %v1370_v16 = vld [vmem:[%s1667_s1 + $0x20] sm:$0xff]  ;;  %p1213_p0 = scmp.ne.s32.totalorder %s758_s25, %s1212_s26  ;;  %p1218_p2 = scmp.lt.s32.totalorder %s1212_s26, %s1212_s26 }
   0x9   :  { %919 = vmatprep.subr.mxu1 %v1234_v4  ;;  %952 = vmatprep.subr.mxu0 %v1234_v4  ;;  %v1379_v17 = vld [vmem:[%s1667_s1 + $0x18] sm:$0xff]  ;;  %v1388_v18 = vld [vmem:[%s1667_s1 + $0x10] sm:$0xff]  ;;  %v1397_v19 = vld [vmem:[%s1667_s1 + $0x8] sm:$0xff] }
   0xa   :  { %920 = vmatpush3.msra.mxu1 %v1286_v7  ;;  %953 = vmatpush3.msra.mxu0 %v1277_v6  ;;  %v765_v20 = vld [vmem:[%s1667_s1 + $0x88] ss:$0 sm:$0xff]  ;;  %v45_v55 = vld [vmem:[%s1667_s1 + $0x100] sm:$0xff]  ;;  %v44_v56 = vld [vmem:[%s1667_s1 + $0xf8] sm:$0xff]  ;;  %p1219_p3 = por %p1218_p2, %p1217_p1 }
   0xb   :  { %921 = vmatprep.subr.mxu1 %v1234_v4  ;;  %954 = vmatprep.subr.mxu0 %v1234_v4  ;;  %v46_v54 = vld [vmem:[%s1667_s1 + $0x108] sm:$0xff]  ;;  %v43_v57 = vld [vmem:[%s1667_s1 + $0xf0] sm:$0xff]  ;;  %v41_v1 = vld [vmem:[%s1667_s1 + $0xe0] sm:$0xff] }
   0xc   :  { %922 = vmatpush3.msra.mxu1 %v1295_v8  ;;  %955 = vmatpush3.msra.mxu0 %v1286_v7  ;;  %v42_v58 = vld [vmem:[%s1667_s1 + $0xe8] sm:$0xff]  ;;  %v40_v2 = vld [vmem:[%s1667_s1 + $0xd8] sm:$0xff]  ;;  %p1220_p4 = pnand %p1219_p3, %p1213_p0 }
   0xd   :  { %923 = vmatprep.subr.mxu1 %v1234_v4  ;;  %956 = vmatprep.subr.mxu0 %v1234_v4 }
   0xe   :  { %924 = vmatpush3.msra.mxu1 %v1304_v9  ;;  %957 = vmatpush3.msra.mxu0 %v1295_v8 }
   0xf   :  { %925 = vmatprep.subr.mxu1 %v1234_v4  ;;  %958 = vmatprep.subr.mxu0 %v1234_v4 }
  0x10   :  { %959 = vmatpush3.msra.mxu0 %v1304_v9  ;;  %926 = vmatpush3.msra.mxu1 %v1320_v10 }
  0x11   :  { %960 = vmatprep.subr.mxu0 %v1234_v4  ;;  %927 = vmatprep.subr.mxu1 %v1234_v4 }
  0x12   :  { %961 = vmatpush3.msra.mxu0 %v1320_v10  ;;  %928 = vmatpush3.msra.mxu1 %v1328_v11 }
  0x13   :  { %962 = vmatprep.subr.mxu0 %v1234_v4  ;;  %929 = vmatprep.subr.mxu1 %v1234_v4 }
  0x14   :  { %963 = vmatpush3.msra.mxu0 %v1328_v11  ;;  %930 = vmatpush3.msra.mxu1 %v1337_v12 }
  0x15   :  { %964 = vmatprep.subr.mxu0 %v1234_v4  ;;  %931 = vmatprep.subr.mxu1 %v1234_v4 }
  0x16   :  { %965 = vmatpush3.msra.mxu0 %v1337_v12  ;;  %932 = vmatpush3.msra.mxu1 %v1346_v13 }
  0x17   :  { %966 = vmatprep.subr.mxu0 %v1234_v4  ;;  %945 = vmatprep.mubr.msk.f32.mxu1 %vm1235_vm1, %v1234_v4 }
  0x18   :  { %933 = vmatprep.subr.mxu1 %v1234_v4  ;;  %967 = vmatpush3.msra.mxu0 %v1346_v13 }
  0x19   :  { %934 = vmatpush3.msra.mxu1 %v1351_v14  ;;  %968 = vmatprep.subr.mxu0 %v1234_v4 }
  0x1a   :  { %935 = vmatprep.subr.mxu1 %v1234_v4  ;;  %969 = vmatpush3.msra.mxu0 %v1351_v14 }
  0x1b   :  { %936 = vmatpush3.msra.mxu1 %v1361_v15  ;;  %970 = vmatprep.subr.mxu0 %v1234_v4 }
  0x1c   :  { %937 = vmatprep.subr.mxu1 %v1234_v4  ;;  %971 = vmatpush3.msra.mxu0 %v1361_v15 }
  0x1d   :  { %938 = vmatpush3.msra.mxu1 %v1370_v16  ;;  %972 = vmatprep.subr.mxu0 %v1234_v4 }
  0x1e   :  { %939 = vmatprep.subr.mxu1 %v1234_v4  ;;  %973 = vmatpush3.msra.mxu0 %v1370_v16 }
  0x1f   :  { %940 = vmatpush3.msra.mxu1 %v1379_v17  ;;  %974 = vmatprep.subr.mxu0 %v1234_v4 }
  0x20   :  { %941 = vmatprep.subr.mxu1 %v1234_v4  ;;  %975 = vmatpush3.msra.mxu0 %v1379_v17 }
  0x21   :  { %942 = vmatpush3.msra.mxu1 %v1388_v18  ;;  %976 = vmatprep.subr.mxu0 %v1234_v4 }
  0x22   :  { %943 = vmatprep.subr.mxu1 %v1234_v4  ;;  %977 = vmatpush3.msra.mxu0 %v1388_v18 }
  0x23   :  { %944 = vmatpush3.msra.mxu1 %v1397_v19  ;;  %978 = vmatprep.subr.mxu0 %v1234_v4 }
  0x24   :  { %979 = vmatpush3.msra.mxu0 %v1397_v19  ;;  %980 = vmatprep.mubr.msk.f32.mxu0 %vm1235_vm1, %v1234_v4 }
  0x25   :  { %983 = vmatprep.subr.mxu1 %v1234_v4  ;;  %1018 = vmatprep.subr.mxu0 %v1234_v4 }
  0xc4   :  { %v912_v21 = vpop.f32.mrf.mxu0 }
  0xc5   :  { %v1414_v22 = vadd.f32 %v912_v21, %v765_v20 }
  0xc6   :  { %v126_v23 = vpop.f32.mrf.mxu0 }
  0xc7   :  { %v1416_v24 = vadd.f32 %v765_v20, %v126_v23 }
  0xc9   :  { %1196 = vtanh.f32 %v1416_v24 }
  0xd6   :  { %v1197_v25 = vpop.eup %1196 }
  0xd7   :  { %946 = vmatmul.mubr.f32.vlgmr.msra.gmra.mxu1 %v1197_v25 }
  0xd8   :  { %984 = vmatpush3.msra.mxu1 %v1264_v3  ;;  %1015 = vmatprep.mubr.msk.f32.mxu1 %vm1235_vm1, %v1234_v4 }
  0xd9   :  { %985 = vmatprep.subr.mxu1 %v1234_v4 }
  0xda   :  { %986 = vmatpush3.msra.mxu1 %v1270_v5 }
  0xdb   :  { %987 = vmatprep.subr.mxu1 %v1234_v4 }
  0xdc   :  { %988 = vmatpush3.msra.mxu1 %v1277_v6 }
  0xdd   :  { %989 = vmatprep.subr.mxu1 %v1234_v4 }
  0xde   :  { %990 = vmatpush3.msra.mxu1 %v1286_v7 }
  0xdf   :  { %991 = vmatprep.subr.mxu1 %v1234_v4 }
  0xe0   :  { %992 = vmatpush3.msra.mxu1 %v1295_v8 }
  0xe1   :  { %993 = vmatprep.subr.mxu1 %v1234_v4 }
  0xe2   :  { %994 = vmatpush3.msra.mxu1 %v1304_v9 }
  0xe3   :  { %995 = vmatprep.subr.mxu1 %v1234_v4 }
  0xe4   :  { %996 = vmatpush3.msra.mxu1 %v1320_v10 }
  0xe5   :  { %997 = vmatprep.subr.mxu1 %v1234_v4 }
  0xe6   :  { %998 = vmatpush3.msra.mxu1 %v1328_v11 }
  0xe7   :  { %999 = vmatprep.subr.mxu1 %v1234_v4 }
  0xe8   :  { %1000 = vmatpush3.msra.mxu1 %v1337_v12 }
  0xe9   :  { %1001 = vmatprep.subr.mxu1 %v1234_v4 }
  0xea   :  { %1002 = vmatpush3.msra.mxu1 %v1346_v13 }
  0xeb   :  { %1003 = vmatprep.subr.mxu1 %v1234_v4 }
  0xec   :  { %1004 = vmatpush3.msra.mxu1 %v1351_v14 }
  0xed   :  { %1005 = vmatprep.subr.mxu1 %v1234_v4 }
  0xee   :  { %1006 = vmatpush3.msra.mxu1 %v1361_v15 }
  0xef   :  { %1007 = vmatprep.subr.mxu1 %v1234_v4 }
  0xf0   :  { %1008 = vmatpush3.msra.mxu1 %v1370_v16 }
  0xf1   :  { %1009 = vmatprep.subr.mxu1 %v1234_v4 }
  0xf2   :  { %1010 = vmatpush3.msra.mxu1 %v1379_v17 }
  0xf3   :  { %1011 = vmatprep.subr.mxu1 %v1234_v4 }
  0xf4   :  { %1012 = vmatpush3.msra.mxu1 %v1388_v18 }
  0xf5   :  { %1013 = vmatprep.subr.mxu1 %v1234_v4 }
  0xf6   :  { %1014 = vmatpush3.msra.mxu1 %v1397_v19 }
  0xf7   :  { %1053 = vmatprep.subr.mxu1 %v1234_v4 }
 0x197   :  { %v202_v26 = vpop.f32.mrf.mxu1 }
 0x198   :  { %v207_v27 = vrot.slane %v202_v26, 6 }
 0x199   :  { %v947_v28 = vpop.f32.mrf.mxu1 }
 0x19a   :  { %v209_v29 = vadd.f32 %v207_v27, %v1416_v24 }
 0x19c   :  { %1198 = vtanh.f32 %v209_v29 }
 0x1a9   :  { %v1199_v30 = vpop.eup %1198 }
 0x1aa   :  { %v212_v31 = vrot.slane %v1199_v30, 2 }
 0x1ac   :  { %981 = vmatmul.mubr.f32.vlgmr.msra.gmra.mxu0 %v212_v31 }
 0x1ad   :  { %1019 = vmatpush3.msra.mxu0 %v1264_v3  ;;  %1050 = vmatprep.mubr.msk.f32.mxu0 %vm1235_vm1, %v1234_v4 }
 0x1ae   :  { %1020 = vmatprep.subr.mxu0 %v1234_v4 }
 0x1af   :  { %1021 = vmatpush3.msra.mxu0 %v1270_v5 }
 0x1b0   :  { %1022 = vmatprep.subr.mxu0 %v1234_v4 }
 0x1b1   :  { %1023 = vmatpush3.msra.mxu0 %v1277_v6 }
 0x1b2   :  { %1024 = vmatprep.subr.mxu0 %v1234_v4 }
 0x1b3   :  { %1025 = vmatpush3.msra.mxu0 %v1286_v7 }
 0x1b4   :  { %1026 = vmatprep.subr.mxu0 %v1234_v4 }
 0x1b5   :  { %1027 = vmatpush3.msra.mxu0 %v1295_v8 }
 0x1b6   :  { %1028 = vmatprep.subr.mxu0 %v1234_v4 }
 0x1b7   :  { %1029 = vmatpush3.msra.mxu0 %v1304_v9 }
 0x1b8   :  { %1030 = vmatprep.subr.mxu0 %v1234_v4 }
 0x1b9   :  { %1031 = vmatpush3.msra.mxu0 %v1320_v10 }
 0x1ba   :  { %1032 = vmatprep.subr.mxu0 %v1234_v4 }
 0x1bb   :  { %1033 = vmatpush3.msra.mxu0 %v1328_v11 }
 0x1bc   :  { %1034 = vmatprep.subr.mxu0 %v1234_v4 }
 0x1bd   :  { %1035 = vmatpush3.msra.mxu0 %v1337_v12 }
 0x1be   :  { %1036 = vmatprep.subr.mxu0 %v1234_v4 }
 0x1bf   :  { %1037 = vmatpush3.msra.mxu0 %v1346_v13 }
 0x1c0   :  { %1038 = vmatprep.subr.mxu0 %v1234_v4 }
 0x1c1   :  { %1039 = vmatpush3.msra.mxu0 %v1351_v14 }
 0x1c2   :  { %1040 = vmatprep.subr.mxu0 %v1234_v4 }
 0x1c3   :  { %1041 = vmatpush3.msra.mxu0 %v1361_v15 }
 0x1c4   :  { %1042 = vmatprep.subr.mxu0 %v1234_v4 }
 0x1c5   :  { %1043 = vmatpush3.msra.mxu0 %v1370_v16 }
 0x1c6   :  { %1044 = vmatprep.subr.mxu0 %v1234_v4 }
 0x1c7   :  { %1045 = vmatpush3.msra.mxu0 %v1379_v17 }
 0x1c8   :  { %1046 = vmatprep.subr.mxu0 %v1234_v4 }
 0x1c9   :  { %1047 = vmatpush3.msra.mxu0 %v1388_v18 }
 0x1ca   :  { %1048 = vmatprep.subr.mxu0 %v1234_v4 }
 0x1cb   :  { %1049 = vmatpush3.msra.mxu0 %v1397_v19 }
 0x1cc   :  { %1088 = vmatprep.subr.mxu0 %v1234_v4 }
 0x26c   :  { %v280_v32 = vpop.f32.mrf.mxu0 }
 0x26d   :  { %v285_v33 = vrot.slane %v280_v32, 4 }
 0x26e   :  { %v982_v34 = vpop.f32.mrf.mxu0 }
 0x26f   :  { %v287_v35 = vadd.f32 %v285_v33, %v1416_v24 }
 0x271   :  { %1200 = vtanh.f32 %v287_v35 }
 0x27e   :  { %v1201_v36 = vpop.eup %1200 }
 0x27f   :  { %v290_v37 = vrot.slane %v1201_v36, 4 }
 0x281   :  { %1016 = vmatmul.mubr.f32.vlgmr.msra.gmra.mxu1 %v290_v37 }
 0x282   :  { %1054 = vmatpush3.msra.mxu1 %v1264_v3  ;;  %1085 = vmatprep.mubr.msk.f32.mxu1 %vm1235_vm1, %v1234_v4 }
 0x283   :  { %1055 = vmatprep.subr.mxu1 %v1234_v4 }
 0x284   :  { %1056 = vmatpush3.msra.mxu1 %v1270_v5 }
 0x285   :  { %1057 = vmatprep.subr.mxu1 %v1234_v4 }
 0x286   :  { %1058 = vmatpush3.msra.mxu1 %v1277_v6 }
 0x287   :  { %1059 = vmatprep.subr.mxu1 %v1234_v4 }
 0x288   :  { %1060 = vmatpush3.msra.mxu1 %v1286_v7 }
 0x289   :  { %1061 = vmatprep.subr.mxu1 %v1234_v4 }
 0x28a   :  { %1062 = vmatpush3.msra.mxu1 %v1295_v8 }
 0x28b   :  { %1063 = vmatprep.subr.mxu1 %v1234_v4 }
 0x28c   :  { %1064 = vmatpush3.msra.mxu1 %v1304_v9 }
 0x28d   :  { %1065 = vmatprep.subr.mxu1 %v1234_v4 }
 0x28e   :  { %1066 = vmatpush3.msra.mxu1 %v1320_v10 }
 0x28f   :  { %1067 = vmatprep.subr.mxu1 %v1234_v4 }
 0x290   :  { %1068 = vmatpush3.msra.mxu1 %v1328_v11 }
 0x291   :  { %1069 = vmatprep.subr.mxu1 %v1234_v4 }
 0x292   :  { %1070 = vmatpush3.msra.mxu1 %v1337_v12 }
 0x293   :  { %1071 = vmatprep.subr.mxu1 %v1234_v4 }
 0x294   :  { %1072 = vmatpush3.msra.mxu1 %v1346_v13 }
 0x295   :  { %1073 = vmatprep.subr.mxu1 %v1234_v4 }
 0x296   :  { %1074 = vmatpush3.msra.mxu1 %v1351_v14 }
 0x297   :  { %1075 = vmatprep.subr.mxu1 %v1234_v4 }
 0x298   :  { %1076 = vmatpush3.msra.mxu1 %v1361_v15 }
 0x299   :  { %1077 = vmatprep.subr.mxu1 %v1234_v4 }
 0x29a   :  { %1078 = vmatpush3.msra.mxu1 %v1370_v16 }
 0x29b   :  { %1079 = vmatprep.subr.mxu1 %v1234_v4 }
 0x29c   :  { %1080 = vmatpush3.msra.mxu1 %v1379_v17 }
 0x29d   :  { %1081 = vmatprep.subr.mxu1 %v1234_v4 }
 0x29e   :  { %1082 = vmatpush3.msra.mxu1 %v1388_v18 }
 0x29f   :  { %1083 = vmatprep.subr.mxu1 %v1234_v4 }
 0x2a0   :  { %1084 = vmatpush3.msra.mxu1 %v1397_v19 }
 0x2a1   :  { %1123 = vmatprep.subr.mxu1 %v1234_v4 }
 0x341   :  { %v358_v38 = vpop.f32.mrf.mxu1 }
 0x342   :  { %v363_v39 = vrot.slane %v358_v38, 2 }
 0x343   :  { %v1017_v40 = vpop.f32.mrf.mxu1 }
 0x344   :  { %v365_v41 = vadd.f32 %v363_v39, %v1416_v24 }
 0x346   :  { %1202 = vtanh.f32 %v365_v41 }
 0x353   :  { %v1203_v42 = vpop.eup %1202 }
 0x354   :  { %v368_v43 = vrot.slane %v1203_v42, 6 }
 0x356   :  { %1051 = vmatmul.mubr.f32.vlgmr.msra.gmra.mxu0 %v368_v43 }
 0x357   :  { %1089 = vmatpush3.msra.mxu0 %v1264_v3  ;;  %1120 = vmatprep.mubr.msk.f32.mxu0 %vm1235_vm1, %v1234_v4 }
 0x358   :  { %1090 = vmatprep.subr.mxu0 %v1234_v4 }
 0x359   :  { %1091 = vmatpush3.msra.mxu0 %v1270_v5 }
 0x35a   :  { %1092 = vmatprep.subr.mxu0 %v1234_v4 }
 0x35b   :  { %1093 = vmatpush3.msra.mxu0 %v1277_v6 }
 0x35c   :  { %1094 = vmatprep.subr.mxu0 %v1234_v4 }
 0x35d   :  { %1095 = vmatpush3.msra.mxu0 %v1286_v7 }
 0x35e   :  { %1096 = vmatprep.subr.mxu0 %v1234_v4 }
 0x35f   :  { %1097 = vmatpush3.msra.mxu0 %v1295_v8 }
 0x360   :  { %1098 = vmatprep.subr.mxu0 %v1234_v4 }
 0x361   :  { %1099 = vmatpush3.msra.mxu0 %v1304_v9 }
 0x362   :  { %1100 = vmatprep.subr.mxu0 %v1234_v4 }
 0x363   :  { %1101 = vmatpush3.msra.mxu0 %v1320_v10 }
 0x364   :  { %1102 = vmatprep.subr.mxu0 %v1234_v4 }
 0x365   :  { %1103 = vmatpush3.msra.mxu0 %v1328_v11 }
 0x366   :  { %1104 = vmatprep.subr.mxu0 %v1234_v4 }
 0x367   :  { %1105 = vmatpush3.msra.mxu0 %v1337_v12 }
 0x368   :  { %1106 = vmatprep.subr.mxu0 %v1234_v4 }
 0x369   :  { %1107 = vmatpush3.msra.mxu0 %v1346_v13 }
 0x36a   :  { %1108 = vmatprep.subr.mxu0 %v1234_v4 }
 0x36b   :  { %1109 = vmatpush3.msra.mxu0 %v1351_v14 }
 0x36c   :  { %1110 = vmatprep.subr.mxu0 %v1234_v4 }
 0x36d   :  { %1111 = vmatpush3.msra.mxu0 %v1361_v15 }
 0x36e   :  { %1112 = vmatprep.subr.mxu0 %v1234_v4 }
 0x36f   :  { %1113 = vmatpush3.msra.mxu0 %v1370_v16 }
 0x370   :  { %1114 = vmatprep.subr.mxu0 %v1234_v4 }
 0x371   :  { %1115 = vmatpush3.msra.mxu0 %v1379_v17 }
 0x372   :  { %1116 = vmatprep.subr.mxu0 %v1234_v4 }
 0x373   :  { %1117 = vmatpush3.msra.mxu0 %v1388_v18 }
 0x374   :  { %1118 = vmatprep.subr.mxu0 %v1234_v4 }
 0x375   :  { %1119 = vmatpush3.msra.mxu0 %v1397_v19 }
 0x376   :  { %1158 = vmatprep.subr.mxu0 %v1234_v4 }
 0x416   :  { %v436_v44 = vpop.f32.mrf.mxu0 }
 0x417   :  { %v440_v45 = vadd.f32 %v436_v44, %v1414_v22 }
 0x418   :  { %v1052_v46 = vpop.f32.mrf.mxu0 }
 0x419   :  { %1204 = vtanh.f32 %v440_v45 }
 0x426   :  { %v1205_v47 = vpop.eup %1204 }
 0x427   :  { %1086 = vmatmul.mubr.f32.vlgmr.msra.gmra.mxu1 %v1205_v47 }
 0x428   :  { %1124 = vmatpush3.msra.mxu1 %v1264_v3  ;;  %1155 = vmatprep.mubr.msk.f32.mxu1 %vm1235_vm1, %v1234_v4  ;;  %v39_v3 = vld [vmem:[%s1667_s1 + $0xd0] sm:$0xff] }
 0x429   :  { %1125 = vmatprep.subr.mxu1 %v1234_v4 }
 0x42a   :  { %1126 = vmatpush3.msra.mxu1 %v1270_v5  ;;  %v38_v5 = vld [vmem:[%s1667_s1 + $0xc8] sm:$0xff] }
 0x42b   :  { %1127 = vmatprep.subr.mxu1 %v1234_v4 }
 0x42c   :  { %1128 = vmatpush3.msra.mxu1 %v1277_v6  ;;  %v37_v6 = vld [vmem:[%s1667_s1 + $0xc0] sm:$0xff] }
 0x42d   :  { %1129 = vmatprep.subr.mxu1 %v1234_v4 }
 0x42e   :  { %1130 = vmatpush3.msra.mxu1 %v1286_v7  ;;  %v36_v7 = vld [vmem:[%s1667_s1 + $0xb8] sm:$0xff] }
 0x42f   :  { %1131 = vmatprep.subr.mxu1 %v1234_v4 }
 0x430   :  { %1132 = vmatpush3.msra.mxu1 %v1295_v8  ;;  %v35_v8 = vld [vmem:[%s1667_s1 + $0xb0] sm:$0xff] }
 0x431   :  { %1133 = vmatprep.subr.mxu1 %v1234_v4 }
 0x432   :  { %1134 = vmatpush3.msra.mxu1 %v1304_v9  ;;  %v34_v9 = vld [vmem:[%s1667_s1 + $0xa8] sm:$0xff] }
 0x433   :  { %1135 = vmatprep.subr.mxu1 %v1234_v4 }
 0x434   :  { %1136 = vmatpush3.msra.mxu1 %v1320_v10  ;;  %v33_v10 = vld [vmem:[%s1667_s1 + $0xa0] sm:$0xff] }
 0x435   :  { %1137 = vmatprep.subr.mxu1 %v1234_v4 }
 0x436   :  { %1138 = vmatpush3.msra.mxu1 %v1328_v11  ;;  %v32_v11 = vld [vmem:[%s1667_s1 + $0x98] sm:$0xff] }
 0x437   :  { %1139 = vmatprep.subr.mxu1 %v1234_v4 }
 0x438   :  { %1140 = vmatpush3.msra.mxu1 %v1337_v12  ;;  %v31_v12 = vld [vmem:[%s1667_s1 + $0x90] sm:$0xff] }
 0x439   :  { %1141 = vmatprep.subr.mxu1 %v1234_v4 }
 0x43a   :  { %1142 = vmatpush3.msra.mxu1 %v1346_v13 }
 0x43b   :  { %1143 = vmatprep.subr.mxu1 %v1234_v4 }
 0x43c   :  { %1144 = vmatpush3.msra.mxu1 %v1351_v14 }
 0x43d   :  { %1145 = vmatprep.subr.mxu1 %v1234_v4 }
 0x43e   :  { %1146 = vmatpush3.msra.mxu1 %v1361_v15 }
 0x43f   :  { %1147 = vmatprep.subr.mxu1 %v1234_v4 }
 0x440   :  { %1148 = vmatpush3.msra.mxu1 %v1370_v16 }
 0x441   :  { %1149 = vmatprep.subr.mxu1 %v1234_v4 }
 0x442   :  { %1150 = vmatpush3.msra.mxu1 %v1379_v17 }
 0x443   :  { %1151 = vmatprep.subr.mxu1 %v1234_v4 }
 0x444   :  { %1152 = vmatpush3.msra.mxu1 %v1388_v18 }
 0x445   :  { %1153 = vmatprep.subr.mxu1 %v1234_v4 }
 0x446   :  { %1154 = vmatpush3.msra.mxu1 %v1397_v19  ;;  %v768_v19 = vld [vmem:[%s1667_s1 + $0x89] ss:$0 sm:$0xff] }
 0x4e7   :  { %v508_v48 = vpop.f32.mrf.mxu1 }
 0x4e8   :  { %v513_v49 = vrot.slane %v508_v48, 6 }
 0x4e9   :  { %v1087_v50 = vpop.f32.mrf.mxu1 }
 0x4ea   :  { %v515_v51 = vadd.f32 %v513_v49, %v1414_v22 }
 0x4ec   :  { %1206 = vtanh.f32 %v515_v51 }
 0x4f9   :  { %v1207_v52 = vpop.eup %1206 }
 0x4fa   :  { %v518_v53 = vrot.slane %v1207_v52, 2 }
 0x4fc   :  { %1121 = vmatmul.mubr.f32.vlgmr.msra.gmra.mxu0 %v518_v53 }
 0x4fd   :  { %1190 = vmatprep.mubr.msk.f32.mxu0 %vm1235_vm1, %v1234_v4  ;;  %1159 = vmatpush3.msra.mxu0 %v46_v54 }
 0x4fe   :  { %1160 = vmatprep.subr.mxu0 %v1234_v4 }
 0x4ff   :  { %1161 = vmatpush3.msra.mxu0 %v45_v55 }
 0x500   :  { %1162 = vmatprep.subr.mxu0 %v1234_v4 }
 0x501   :  { %1163 = vmatpush3.msra.mxu0 %v44_v56 }
 0x502   :  { %1164 = vmatprep.subr.mxu0 %v1234_v4 }
 0x503   :  { %1165 = vmatpush3.msra.mxu0 %v43_v57 }
 0x504   :  { %1166 = vmatprep.subr.mxu0 %v1234_v4 }
 0x505   :  { %1167 = vmatpush3.msra.mxu0 %v42_v58 }
 0x506   :  { %1168 = vmatprep.subr.mxu0 %v1234_v4 }
 0x507   :  { %1169 = vmatpush3.msra.mxu0 %v41_v1 }
 0x508   :  { %1170 = vmatprep.subr.mxu0 %v1234_v4 }
 0x509   :  { %1171 = vmatpush3.msra.mxu0 %v40_v2 }
 0x50a   :  { %1172 = vmatprep.subr.mxu0 %v1234_v4 }
 0x50b   :  { %1173 = vmatpush3.msra.mxu0 %v39_v3 }
 0x50c   :  { %1174 = vmatprep.subr.mxu0 %v1234_v4 }
 0x50d   :  { %1175 = vmatpush3.msra.mxu0 %v38_v5 }
 0x50e   :  { %1176 = vmatprep.subr.mxu0 %v1234_v4 }
 0x50f   :  { %1177 = vmatpush3.msra.mxu0 %v37_v6 }
 0x510   :  { %1178 = vmatprep.subr.mxu0 %v1234_v4 }
 0x511   :  { %1179 = vmatpush3.msra.mxu0 %v36_v7 }
 0x512   :  { %1180 = vmatprep.subr.mxu0 %v1234_v4 }
 0x513   :  { %1181 = vmatpush3.msra.mxu0 %v35_v8 }
 0x514   :  { %1182 = vmatprep.subr.mxu0 %v1234_v4 }
 0x515   :  { %1183 = vmatpush3.msra.mxu0 %v34_v9 }
 0x516   :  { %1184 = vmatprep.subr.mxu0 %v1234_v4 }
 0x517   :  { %1185 = vmatpush3.msra.mxu0 %v33_v10 }
 0x518   :  { %1186 = vmatprep.subr.mxu0 %v1234_v4 }
 0x519   :  { %1187 = vmatpush3.msra.mxu0 %v32_v11 }
 0x51a   :  { %1188 = vmatprep.subr.mxu0 %v1234_v4 }
 0x51b   :  { %1189 = vmatpush3.msra.mxu0 %v31_v12 }
 0x5bc   :  { %v586_v59 = vpop.f32.mrf.mxu0 }
 0x5bd   :  { %v591_v60 = vrot.slane %v586_v59, 4 }
 0x5be   :  { %v1122_v61 = vpop.f32.mrf.mxu0 }
 0x5bf   :  { %v593_v62 = vadd.f32 %v591_v60, %v1414_v22 }
 0x5c1   :  { %1208 = vtanh.f32 %v593_v62 }
 0x5ce   :  { %v1209_v63 = vpop.eup %1208 }
 0x5cf   :  { %v596_v0 = vrot.slane %v1209_v63, 4 }
 0x5d1   :  { %1156 = vmatmul.mubr.f32.vlgmr.msra.gmra.mxu1 %v596_v0 }
 0x691   :  { %v664_v13 = vpop.f32.mrf.mxu1 }
 0x692   :  { %v669_v14 = vrot.slane %v664_v13, 2 }
 0x693   :  { %v1157_v15 = vpop.f32.mrf.mxu1 }
 0x694   :  { %v671_v16 = vadd.f32 %v669_v14, %v1414_v22 }
 0x696   :  { %1210 = vtanh.f32 %v671_v16 }
 0x6a3   :  { %v1211_v17 = vpop.eup %1210 }
 0x6a4   :  { %v678_v18 = vrot.slane %v1211_v17, 6 }
 0x6a6   :  { %1191 = vmatmul.mubr.f32.vlgmr.msra.gmra.mxu0 %v678_v18 }
 0x766   :  { %v746_v4 = vpop.f32.mrf.mxu0 }
 0x767   :  { %v747_v20 = vadd.f32 %v768_v19, %v746_v4 }
 0x768   :  { %v1192_v21 = vpop.f32.mrf.mxu0 }
 0x769   :  { %750 = vst [vmem:[#allocation2] sm:$0x3] %v747_v20 }
 0x76a   :  { %1223 = shalt.err (!%p1220_p4)
}
 0x76b   :  { %760 = dma.vmem_to_hbm [thread:$0]  %s758_s25, 32, %s1668_s2, [#allocation3]  }
 0x76c   :  { %1232 = dma.done.wait [#allocation3], 32  }
 0x76d   :  { %1233 = vsyncadd [#allocation3], 4294967264 }
 0x76e   :  { %764 = vsyncpa [#allocation3], 1 }

</bundles_post_ra>
